<compile_context>
chip_gen: v6e
topology: v6e:2x2x1
jax: 0.10.0
libtpu: 0.0.40
codegen_flags: <defaults>
</compile_context>

<pallas_src>
import functools

import jax
import jax.numpy as jnp
from jax.experimental import pallas as pl
from jax.experimental.pallas import tpu as pltpu

_TARGET_BLOCK_BYTES = 4 * 1024 * 1024   # ~4 MiB streaming blocks
_MAX_TILE_ROWS = 8192


def _round_up(x, m):
    return (x + m - 1) // m * m


def _hinge_sum_kernel(a_ref, b_ref, sw_ref, out_ref, acc_ref, *,
                      margin, sign, n_pairs, pack, tile, steps, precision):
    """One hinge stream: sum over valid pairs of relu(sign * (dist - margin))."""
    c = pl.program_id(0)          # core / "parallel" axis
    i = pl.program_id(1)          # sequential reduction axis

    @pl.when(i == 0)
    def _init():
        acc_ref[...] = jnp.zeros_like(acc_ref)

    a = a_ref[...].astype(jnp.float32)
    b = b_ref[...].astype(jnp.float32)
    diff = a - b
    # Weighted per-pair distances: one MXU matmul against the resident
    # block-diagonal (pack*D, pack) weight/selector matrix -> (tile, pack).
    dist = jnp.dot(diff * diff, sw_ref[...],
                   preferred_element_type=jnp.float32,
                   precision=precision)

    # Original pair index of every (packed_row, slot) -> valid / tail mask.
    row_start = (c * steps + i) * tile
    r_id = jax.lax.broadcasted_iota(jnp.int32, dist.shape, 0)
    p_id = jax.lax.broadcasted_iota(jnp.int32, dist.shape, 1)
    pair_id = (row_start + r_id) * pack + p_id
    valid = pair_id < n_pairs

    hinge = jnp.maximum(sign * (dist - margin), 0.0)
    # jnp.where is a select, so garbage/NaN in masked (padded/duplicate) slots
    # cannot leak into the sum.
    contrib = jnp.where(valid, hinge, jnp.zeros_like(hinge))

    # Per-step accumulation = pure cross-vreg VALU adds into an (8, pack)
    # scratch; the single cross-sublane/cross-lane XLU reduce runs at finalize.
    acc_ref[...] = acc_ref[...] + jnp.sum(
        contrib.reshape(tile // 8, 8, pack), axis=0)

    @pl.when(i == steps - 1)
    def _finalize():
        total = jnp.sum(acc_ref[...], keepdims=True)            # (1, 1)
        # Lane-dense (8,128) output block; wrapper reads element [0,0] per core.
        out_ref[...] = jnp.broadcast_to(total, out_ref.shape)


def _hinge_sum(a, b, s_w, *, margin, sign, n_pairs, pack, precision,
               core_parallel=False, buffer_count=2):
    """Sum over one packed stream of relu(sign * (weighted_sq_dist - margin))."""
    n_rows, w_lanes = a.shape
    itemsize = jnp.dtype(a.dtype).itemsize
    bytes_per_row = w_lanes * itemsize

    # Tile sizing: biggest multiple-of-8 row tile giving ~4 MiB per block per
    # stream, capped at 8192 rows and at the data size itself.
    tile = (_TARGET_BLOCK_BYTES // bytes_per_row) // 8 * 8
    tile = max(8, min(_MAX_TILE_ROWS, tile))
    tile = min(tile, _round_up(n_rows, 8))

    n_blocks = -(-n_rows // tile)
    n_cores = 2 if n_blocks >= 2 else 1          # leading "parallel" grid axis
    steps = -(-n_blocks // n_cores)

    # Clamp the block index so no block is fully out of bounds; duplicate and
    # ragged-tail rows are excluded by the in-kernel pair_id mask.
    def stream_map(c, i):
        return (jnp.minimum(c * steps + i, n_blocks - 1), 0)

    stream_kwargs = {}
    if buffer_count > 2:                          # optional deeper pipelining
        stream_kwargs["pipeline_mode"] = pl.Buffered(buffer_count)
    stream_spec = pl.BlockSpec((tile, w_lanes), stream_map, **stream_kwargs)

    kernel = functools.partial(
        _hinge_sum_kernel,
        margin=float(margin), sign=float(sign), n_pairs=int(n_pairs),
        pack=int(pack), tile=int(tile), steps=int(steps), precision=precision)

    # VMEM budget: 2 streams x buffer_count pipeline buffers x block, plus the
    # resident selector / output / accumulator, with ~2x headroom.  Stays well
    # under the 32 MiB default scoped limit and v7x's 64 MiB physical VMEM.
    block_bytes = tile * w_lanes * itemsize
    vmem_need = (2 * max(2, buffer_count) * block_bytes
                 + w_lanes * pack * 4 + 2 * 8 * 128 * 4 + 8 * pack * 4)
    vmem_limit = int(min(max(2 * vmem_need, 4 << 20), 48 << 20))

    cost = pl.CostEstimate(
        flops=int(n_rows * w_lanes * (2 * pack + 4)),
        transcendentals=0,
        bytes_accessed=int(2 * n_rows * w_lanes * itemsize + n_cores * 8 * 128 * 4))

    if core_parallel:
        # Explicit cross-TensorCore sharding of the leading axis (v7x has two
        # TCs per chip).  Plain "parallel" stays the default for portability.
        semantics = (pltpu.CORE_PARALLEL, pltpu.ARBITRARY)
    else:
        semantics = ("parallel", "arbitrary")

    out = pl.pallas_call(
        kernel,
        out_shape=jax.ShapeDtypeStruct((n_cores * 8, 128), jnp.float32),
        grid=(n_cores, steps),
        in_specs=[
            stream_spec,                                        # a  (pipelined)
            stream_spec,                                        # b  (pipelined)
            pl.BlockSpec((w_lanes, pack), lambda c, i: (0, 0)),  # resident sel
        ],
        out_specs=pl.BlockSpec((8, 128), lambda c, i: (c, 0)),
        scratch_shapes=[pltpu.VMEM((8, pack), jnp.float32)],
        compiler_params=pltpu.CompilerParams(
            dimension_semantics=semantics,
            vmem_limit_bytes=vmem_limit),
        cost_estimate=cost,
    )(a, b, s_w)

    # Per-core partial sums sit at rows 0, 8, 16, ...
    return jnp.sum(out[::8, 0])


def _reference(pos1, pos2, neg1, neg2, weights, margin1, margin2, beta):
    dist = lambda x, y: jnp.sum(weights * (x - y) ** 2, axis=-1)
    loss = jnp.sum(jnp.maximum(dist(pos1, pos2) - margin1, 0.0))
    loss = loss + jnp.sum(jnp.maximum(margin2 - dist(neg1, neg2), 0.0))
    loss = loss + beta * jnp.sum(weights ** 2)
    return loss


def metric_learning_loss(pos1, pos2, neg1, neg2, weights,
                         margin1=1.0, margin2=4.0, beta=0.01, *,
                         mxu_precision=None, force_kernel=False,
                         small_problem_threshold=4096,
                         core_parallel=False, buffer_count=2):
    """Pallas TPU MetricLearingLoss.forward for the weighted squared metric.

    pos1, pos2: (Np, D) positive pairs (float32 or bfloat16)
    neg1, neg2: (Nn, D) negative pairs  (float32 or bfloat16)
    weights:    (1, D) or (D,) dist_func.weights
    returns scalar float32 loss.
    """
    n_pos, d = pos1.shape
    n_neg = neg1.shape[0]
    w = jnp.asarray(weights).reshape(-1).astype(jnp.float32)
    reg = beta * jnp.sum(w * w)

    # Small-problem fast path: kernel launch + grid overhead dominates below a
    # few thousand pairs; XLA fusion of the reference is strictly faster there.
    if not force_kernel and (n_pos + n_neg) < small_problem_threshold:
        return _reference(pos1.astype(jnp.float32), pos2.astype(jnp.float32),
                          neg1.astype(jnp.float32), neg2.astype(jnp.float32),
                          w[None, :], margin1, margin2, beta)

    # Accuracy contract: HIGHEST (f32-exact) for f32 streams; for bf16 streams
    # the input quantization already dominates, so a single-pass MXU matmul is
    # free accuracy-wise and ~6x fewer MXU pushes (matters on v6e/v7x).
    if mxu_precision is None:
        if jnp.dtype(pos1.dtype).itemsize < 4:
            mxu_precision = jax.lax.Precision.DEFAULT
        else:
            mxu_precision = jax.lax.Precision.HIGHEST

    def one_stream(x, y, n, margin, sign):
        if n == 0:
            return jnp.float32(0.0)
        # Pack P = 128//D pairs per 128-lane row when possible: the reshape of
        # a contiguous (N, D) array to (N//P, P*D) is free (no HBM copy).
        cand = 128 // d if (d <= 128 and 128 % d == 0) else 1
        pack = cand if (cand >= 1 and n % max(cand, 1) == 0) else 1
        xr = x.reshape(n // pack, pack * d)
        yr = y.reshape(n // pack, pack * d)
        s_w = jnp.kron(jnp.eye(pack, dtype=jnp.float32), w[:, None])  # (P*D, P)
        return _hinge_sum(xr, yr, s_w, margin=margin, sign=sign, n_pairs=n,
                          pack=pack, precision=mxu_precision,
                          core_parallel=core_parallel,
                          buffer_count=buffer_count)

    pos_loss = one_stream(pos1, pos2, n_pos, margin1, +1.0)   # relu(d - m1)
    neg_loss = one_stream(neg1, neg2, n_neg, margin2, -1.0)   # relu(m2 - d)
    return pos_loss + neg_loss + reg


if __name__ == "__main__":
    key = jax.random.PRNGKey(0)
    Np, Nn, D = 64, 64, 32
    margin1, margin2, beta = 1.0, 4.0, 0.01

    k1, k2, k3, k4, k5 = jax.random.split(key, 5)
    pos_base = jax.random.normal(k1, (Np, D), jnp.float32)
    pos1 = pos_base
    pos2 = pos_base + 0.3 * jax.random.normal(k2, (Np, D), jnp.float32)
    neg1 = jax.random.normal(k3, (Nn, D), jnp.float32)
    neg2 = jax.random.normal(k4, (Nn, D), jnp.float32) + 2.0

    # Deterministic synthetic "dist_func.weights" (positive per-dim weights).
    weights = 0.5 + jnp.abs(jax.random.normal(k5, (1, D), jnp.float32))

    ref = _reference(pos1, pos2, neg1, neg2, weights, margin1, margin2, beta)

    # f32 streams through the Pallas path (force past the small-N fast path).
    loss = metric_learning_loss(pos1, pos2, neg1, neg2, weights,
                                margin1=margin1, margin2=margin2, beta=beta,
                                force_kernel=True)
    loss = jax.block_until_ready(loss)
    assert jnp.allclose(loss, ref, rtol=1e-4, atol=1e-3), (loss, ref)

    # bf16 streams (halved HBM traffic on this memory-bound kernel); only the
    # stream quantization differs, so compare loosely vs. the f32 reference.
    loss_bf16 = metric_learning_loss(
        pos1.astype(jnp.bfloat16), pos2.astype(jnp.bfloat16),
        neg1.astype(jnp.bfloat16), neg2.astype(jnp.bfloat16), weights,
        margin1=margin1, margin2=margin2, beta=beta, force_kernel=True)
    loss_bf16 = jax.block_until_ready(loss_bf16)
    assert jnp.allclose(loss_bf16, ref, rtol=5e-2, atol=5e-1), (loss_bf16, ref)

    print("KERNEL_OK")
</pallas_src>

<mosaic_0001>
module attributes {stable_mosaic.version = 11 : i64} {
  func.func @_hinge_sum_kernel(%arg0: i32, %arg1: i32, %arg2: memref<16x128xf32, #tpu.memory_space<vmem>>, %arg3: memref<16x128xf32, #tpu.memory_space<vmem>>, %arg4: memref<128x4xf32, #tpu.memory_space<vmem>>, %arg5: memref<8x128xf32, #tpu.memory_space<vmem>>, %arg6: memref<8x4xf32, #tpu.memory_space<vmem>>) attributes {dimension_semantics = [#tpu.dimension_semantics<parallel>, #tpu.dimension_semantics<arbitrary>], iteration_bounds = array<i64: 1, 1>, scalar_prefetch = 0 : i64, scratch_operands = 1 : i64, tpu.core_type = #tpu.core_type<tc>, window_params = [{transform_indices = @transform_0, window_bounds = array<i64: 16, 128>}, {transform_indices = @transform_1, window_bounds = array<i64: 16, 128>}, {pipeline_mode = #tpu.pipeline_mode<synchronous>, transform_indices = @transform_2, window_bounds = array<i64: 128, 4>}, {transform_indices = @transform_3, window_bounds = array<i64: 8, 128>}]} {
    %c0_i32 = arith.constant 0 : i32
    %0 = arith.cmpi eq, %arg1, %c0_i32 : i32
    %1 = arith.extui %0 : i1 to i32
    %c0_i32_0 = arith.constant 0 : i32
    %2 = arith.cmpi ne, %1, %c0_i32_0 : i32
    scf.if %2 {
      %cst_17 = arith.constant 0.000000e+00 : f32
      %37 = vector.broadcast %cst_17 : f32 to vector<8x4xf32>
      %c0_18 = arith.constant 0 : index
      %c0_19 = arith.constant 0 : index
      %38 = vector.load %arg6[%c0_18, %c0_19] : memref<8x4xf32, #tpu.memory_space<vmem>>, vector<8x4xf32>
      tpu.vector_store %arg6[%c0_18, %c0_19], %37 {strides = array<i32>} : memref<8x4xf32, #tpu.memory_space<vmem>>, vector<8x4xf32>,
    } else {
    }
    %c0 = arith.constant 0 : index
    %c0_1 = arith.constant 0 : index
    %3 = vector.load %arg2[%c0, %c0_1] : memref<16x128xf32, #tpu.memory_space<vmem>>, vector<16x128xf32>
    %c0_2 = arith.constant 0 : index
    %c0_3 = arith.constant 0 : index
    %4 = vector.load %arg3[%c0_2, %c0_3] : memref<16x128xf32, #tpu.memory_space<vmem>>, vector<16x128xf32>
    %5 = arith.subf %3, %4 : vector<16x128xf32>
    %6 = arith.mulf %5, %5 : vector<16x128xf32>
    %c0_4 = arith.constant 0 : index
    %c0_5 = arith.constant 0 : index
    %7 = vector.load %arg4[%c0_4, %c0_5] : memref<128x4xf32, #tpu.memory_space<vmem>>, vector<128x4xf32>
    %cst = arith.constant dense<0.000000e+00> : vector<16x4xf32>
    %8 = tpu.matmul %6, %7, %cst {dimension_numbers = #tpu.dot_dimension_numbers<[1], [0], [0], [1], [0, 0, 1, 1], [], []>, precision = #tpu.contract_precision<fp32>} : vector<16x128xf32>, vector<128x4xf32>, vector<16x4xf32> -> vector<16x4xf32>
    %c1_i32 = arith.constant 1 : i32
    %9 = arith.muli %arg0, %c1_i32 : i32
    %10 = arith.addi %9, %arg1 : i32
    %c16_i32 = arith.constant 16 : i32
    %11 = arith.muli %10, %c16_i32 : i32
    %12 = tpu.iota {dimensions = array<i32: 0>} : vector<16x4xi32>
    %13 = tpu.iota {dimensions = array<i32: 1>} : vector<16x4xi32>
    %14 = vector.broadcast %11 : i32 to vector<16x4xi32>
    %15 = arith.addi %14, %12 : vector<16x4xi32>
    %c4_i32 = arith.constant 4 : i32
    %16 = vector.broadcast %c4_i32 : i32 to vector<16x4xi32>
    %17 = arith.muli %15, %16 : vector<16x4xi32>
    %18 = arith.addi %17, %13 : vector<16x4xi32>
    %c64_i32 = arith.constant 64 : i32
    %19 = vector.broadcast %c64_i32 : i32 to vector<16x4xi32>
    %20 = arith.cmpi slt, %18, %19 : vector<16x4xi32>
    %cst_6 = arith.constant 1.000000e+00 : f32
    %21 = vector.broadcast %cst_6 : f32 to vector<16x4xf32>
    %22 = arith.subf %8, %21 : vector<16x4xf32>
    %cst_7 = arith.constant 1.000000e+00 : f32
    %23 = vector.broadcast %cst_7 : f32 to vector<16x4xf32>
    %24 = arith.mulf %23, %22 : vector<16x4xf32>
    %cst_8 = arith.constant 0.000000e+00 : f32
    %25 = vector.broadcast %cst_8 : f32 to vector<16x4xf32>
    %26 = arith.maximumf %24, %25 : vector<16x4xf32>
    %cst_9 = arith.constant 0.000000e+00 : f32
    %27 = vector.broadcast %cst_9 : f32 to vector<16x4xf32>
    %28 = arith.select %20, %26, %27 : vector<16x4xi1>, vector<16x4xf32>
    %c0_10 = arith.constant 0 : index
    %c0_11 = arith.constant 0 : index
    %29 = vector.load %arg6[%c0_10, %c0_11] : memref<8x4xf32, #tpu.memory_space<vmem>>, vector<8x4xf32>
    %30 = vector.shape_cast %28 : vector<16x4xf32> to vector<2x8x4xf32>
    %cst_12 = arith.constant dense<0.000000e+00> : vector<8x4xf32>
    %31 = vector.multi_reduction <add>, %30, %cst_12 [0] : vector<2x8x4xf32> to vector<8x4xf32>
    %32 = arith.addf %29, %31 : vector<8x4xf32>
    %c0_13 = arith.constant 0 : index
    %c0_14 = arith.constant 0 : index
    %33 = vector.load %arg6[%c0_13, %c0_14] : memref<8x4xf32, #tpu.memory_space<vmem>>, vector<8x4xf32>
    tpu.vector_store %arg6[%c0_13, %c0_14], %32 {strides = array<i32>} : memref<8x4xf32, #tpu.memory_space<vmem>>, vector<8x4xf32>,
    %c0_i32_15 = arith.constant 0 : i32
    %34 = arith.cmpi eq, %arg1, %c0_i32_15 : i32
    %35 = arith.extui %34 : i1 to i32
    %c0_i32_16 = arith.constant 0 : i32
    %36 = arith.cmpi ne, %35, %c0_i32_16 : i32
    scf.if %36 {
      %c0_17 = arith.constant 0 : index
      %c0_18 = arith.constant 0 : index
      %37 = vector.load %arg6[%c0_17, %c0_18] : memref<8x4xf32, #tpu.memory_space<vmem>>, vector<8x4xf32>
      %38 = vector.shape_cast %37 : vector<8x4xf32> to vector<1x8x4xf32>
      %cst_19 = arith.constant dense<0.000000e+00> : vector<1xf32>
      %39 = vector.multi_reduction <add>, %38, %cst_19 [1, 2] : vector<1x8x4xf32> to vector<1xf32>
      %40 = vector.shape_cast %39 : vector<1xf32> to vector<1x1x1xf32>
      %41 = vector.extract %40[0, 0, 0] : f32 from vector<1x1x1xf32>
      %42 = vector.broadcast %41 : f32 to vector<1x1xf32>
      %43 = vector.shape_cast %42 : vector<1x1xf32> to vector<1x1xf32>
      %44 = vector.broadcast %43 : vector<1x1xf32> to vector<8x128xf32>
      %c0_20 = arith.constant 0 : index
      %c0_21 = arith.constant 0 : index
      %45 = vector.load %arg5[%c0_20, %c0_21] : memref<8x128xf32, #tpu.memory_space<vmem>>, vector<8x128xf32>
      tpu.vector_store %arg5[%c0_20, %c0_21], %44 {strides = array<i32>} : memref<8x128xf32, #tpu.memory_space<vmem>>, vector<8x128xf32>,
    } else {
    }
    return
  }
  func.func @transform_0(%arg0: i32, %arg1: i32) -> (i32, i32) {
    %c1_i32 = arith.constant 1 : i32
    %0 = arith.muli %arg0, %c1_i32 : i32
    %1 = arith.addi %0, %arg1 : i32
    %c0_i32 = arith.constant 0 : i32
    %2 = arith.minsi %1, %c0_i32 : i32
    %c0_i32_0 = arith.constant 0 : i32
    %c0_i32_1 = arith.constant 0 : i32
    return %2, %c0_i32_0 : i32, i32
  }
  func.func @transform_1(%arg0: i32, %arg1: i32) -> (i32, i32) {
    %c1_i32 = arith.constant 1 : i32
    %0 = arith.muli %arg0, %c1_i32 : i32
    %1 = arith.addi %0, %arg1 : i32
    %c0_i32 = arith.constant 0 : i32
    %2 = arith.minsi %1, %c0_i32 : i32
    %c0_i32_0 = arith.constant 0 : i32
    %c0_i32_1 = arith.constant 0 : i32
    return %2, %c0_i32_0 : i32, i32
  }
  func.func @transform_2(%arg0: i32, %arg1: i32) -> (i32, i32) {
    %c0_i32 = arith.constant 0 : i32
    %c0_i32_0 = arith.constant 0 : i32
    %c0_i32_1 = arith.constant 0 : i32
    return %c0_i32, %c0_i32_0 : i32, i32
  }
  func.func @transform_3(%arg0: i32, %arg1: i32) -> (i32, i32) {
    %c0_i32 = arith.constant 0 : i32
    %c0_i32_0 = arith.constant 0 : i32
    return %arg0, %c0_i32 : i32, i32
  }
}

</mosaic_0001>

<bundles_post_ra>
// kernel: tpu_custom_call.1
= control target key start
LH: loop header
LB: loop body
LE: loop exit
PB: predicated region body
PF: predicated region fallthrough
CT: control target
= control target key end

     0   :  { %s1650_s0 = inlined_call_operand.vmem [shape: f32[16,128], index: 0, kind: input, shape index: {}]   ;;  %s1651_s1 = inlined_call_operand.vmem [shape: f32[16,128], index: 1, kind: input, shape index: {}]   ;;  %s1652_s2 = inlined_call_operand.vmem [shape: f32[128,4], index: 2, kind: input, shape index: {}]   ;;  %s1653_s3 = inlined_call_operand.hbm [shape: f32[8,128], index: 3, kind: output, shape index: {}]  }
   0x1   :  { %v108_v0 = vld [vmem:[%s1652_s2 + $0x78] sm:$0xff]  ;;  %v107_v1 = vld [vmem:[%s1652_s2 + $0x70] sm:$0xff]  ;;  %v106_v2 = vld [vmem:[%s1652_s2 + $0x68] sm:$0xff] }
   0x2   :  { %v1241_v3 = vand.u32 4294901760, %v108_v0  ;;  %v1243_v4 = vand.u32 4294901760, %v107_v1  ;;  %v1245_v5 = vand.u32 4294901760, %v106_v2  ;;  %v105_v6 = vld [vmem:[%s1652_s2 + $0x60] sm:$0xff]  ;;  %v104_v7 = vld [vmem:[%s1652_s2 + $0x58] sm:$0xff]  ;;  %v103_v8 = vld [vmem:[%s1652_s2 + $0x50] sm:$0xff] }
   0x3   :  { %v1256_v9 = vand.u32 4294901760, %v105_v6  ;;  %v1258_v10 = vand.u32 4294901760, %v104_v7  ;;  %v1260_v11 = vand.u32 4294901760, %v103_v8  ;;  %v102_v12 = vld [vmem:[%s1652_s2 + $0x48] sm:$0xff]  ;;  %v101_v13 = vld [vmem:[%s1652_s2 + $0x40] sm:$0xff]  ;;  %v100_v18 = vld [vmem:[%s1652_s2 + $0x38] sm:$0xff] }
   0x4   :  { %974 = vmatprep.subr.mxu0 %v1241_v3  ;;  %v1270_v14 = vsub.f32 %v108_v0, %v1241_v3  ;;  %v1273_v15 = vsub.f32 %v107_v1, %v1243_v4  ;;  %v1275_v16 = vand.u32 4294901760, %v102_v12  ;;  %v1278_v17 = vsub.f32 %v106_v2, %v1245_v5  ;;  %v99_v28 = vld [vmem:[%s1652_s2 + $0x30] sm:$0xff] }
   0x5   :  { %975 = vmatpush3.msra.mxu0 %v1241_v3  ;;  %v1285_v19 = vsub.f32 %v105_v6, %v1256_v9  ;;  %v1288_v20 = vsub.f32 %v104_v7, %v1258_v10  ;;  %v1300_v24 = vand.u32 4294901760, %v101_v13  ;;  %v1306_v26 = vand.u32 4294901760, %v100_v18 }
   0x6   :  { %976 = vmatprep.subr.mxu0 %v1243_v4  ;;  %v1292_v21 = vand.u32 4294901760, %v1270_v14  ;;  %v1295_v22 = vand.u32 4294901760, %v1273_v15  ;;  %v1298_v23 = vand.u32 4294901760, %v1278_v17  ;;  %v1315_v29 = vsub.f32 %v103_v8, %v1260_v11 }
   0x7   :  { %977 = vmatpush3.msra.mxu0 %v1243_v4  ;;  %v1304_v25 = vand.u32 4294901760, %v1285_v19  ;;  %v1309_v27 = vand.u32 4294901760, %v1288_v20  ;;  %v1325_v33 = vsub.f32 %v102_v12, %v1275_v16 }
   0x8   :  { %978 = vmatprep.subr.mxu0 %v1245_v5  ;;  %v214_v30 = vsub.f32 %v1270_v14, %v1292_v21  ;;  %v221_v31 = vsub.f32 %v1273_v15, %v1295_v22  ;;  %v228_v32 = vsub.f32 %v1278_v17, %v1298_v23 }
   0x9   :  { %8 = vsyncpa [#allocation4], 0  ;;  %979 = vmatpush3.msra.mxu0 %v1245_v5  ;;  %v1329_v34 = vand.u32 4294901760, %v1315_v29  ;;  %v98_v35 = vld [vmem:[%s1652_s2 + $0x28] sm:$0xff]  ;;  %v235_v38 = vsub.f32 %v1285_v19, %v1304_v25  ;;  %v1337_v39 = vand.u32 4294901760, %v99_v28  ;;  %v242_v40 = vsub.f32 %v1288_v20, %v1309_v27  ;;  %v97_v42 = vld [vmem:[%s1652_s2 + $0x20] sm:$0xff] }
   0xa   :  { %980 = vmatprep.subr.mxu0 %v1256_v9  ;;  %v215_v36 = vand.u32 4294901760, %v214_v30  ;;  %v222_v37 = vand.u32 4294901760, %v221_v31  ;;  %v1343_v41 = vand.u32 4294901760, %v1325_v33  ;;  %v1349_v43 = vsub.f32 %v101_v13, %v1300_v24  ;;  %v85_v47 = vld [vmem:[%s1650_s0] sm:$0xff]  ;;  %v96_v50 = vld [vmem:[%s1652_s2 + $0x18] sm:$0xff]  ;;  %v86_v51 = vld [vmem:[%s1650_s0 + $0x8] sm:$0xff] }
   0xb   :  { %981 = vmatpush3.msra.mxu0 %v1256_v9  ;;  %v229_v44 = vand.u32 4294901760, %v228_v32  ;;  %v1352_v45 = vand.u32 4294901760, %v98_v35  ;;  %v1355_v46 = vsub.f32 %v100_v18, %v1306_v26  ;;  %v87_v48 = vld [vmem:[%s1651_s1] sm:$0xff]  ;;  %v249_v49 = vsub.f32 %v1315_v29, %v1329_v34  ;;  %v88_v52 = vld [vmem:[%s1651_s1 + $0x8] sm:$0xff]  ;;  %v95_v62 = vld [vmem:[%s1652_s2 + $0x10] sm:$0xff] }
   0xc   :  { %982 = vmatprep.subr.mxu0 %v1258_v10  ;;  %1009 = vmatprep.subr.mxu1 %v215_v36  ;;  %v236_v53 = vand.u32 4294901760, %v235_v38  ;;  %v1376_v54 = vand.u32 4294901760, %v97_v42  ;;  %v1379_v55 = vand.u32 4294901760, %v1349_v43  ;;  %v1382_v56 = vsub.f32 %v99_v28, %v1337_v39  ;;  %v94_v8 = vld [vmem:[%s1652_s2 + $0x8] sm:$0xff] }
   0xd   :  { %983 = vmatpush3.msra.mxu0 %v1258_v10  ;;  %1010 = vmatpush3.msra.mxu1 %v215_v36  ;;  %v243_v57 = vand.u32 4294901760, %v242_v40  ;;  %v256_v58 = vsub.f32 %v1325_v33, %v1343_v41  ;;  %v89_v59 = vsub.f32 %v85_v47, %v87_v48  ;;  %v1388_v60 = vand.u32 4294901760, %v96_v50 }
   0xe   :  { %984 = vmatprep.subr.mxu0 %v1260_v11  ;;  %1011 = vmatprep.subr.mxu1 %v222_v37  ;;  %v1391_v61 = vand.u32 4294901760, %v1355_v46  ;;  %v1397_v63 = vsub.f32 %v98_v35, %v1352_v45  ;;  %v90_v0 = vsub.f32 %v86_v51, %v88_v52  ;;  %v250_v1 = vand.u32 4294901760, %v249_v49  ;;  %v93_v35 = vld [vmem:[%s1652_s2] sm:$0xff]  ;;  %s1211_s2 = smov [#allocation3]  }
   0xf   :  { %985 = vmatpush3.msra.mxu0 %v1260_v11  ;;  %1012 = vmatpush3.msra.mxu1 %v222_v37  ;;  %v91_v2 = vmul.f32 %v89_v59, %v89_v59  ;;  %v263_v6 = vsub.f32 %v1349_v43, %v1379_v55  ;;  %v1404_v7 = vand.u32 4294901760, %v1382_v56  ;;  %v1410_v12 = vsub.f32 %v97_v42, %v1376_v54  ;;  %s844_s23 = sshll.u32 %s1211_s2, 4  ;;  %s845_s23 = int_to_ptr.vmem [resolvable:$true] %s844_s23 }
  0x10   :  { %986 = vmatprep.subr.mxu0 %v1275_v16  ;;  %1013 = vmatprep.subr.mxu1 %v229_v44  ;;  %v92_v13 = vmul.f32 %v90_v0, %v90_v0  ;;  %v257_v18 = vand.u32 4294901760, %v256_v58  ;;  %v1413_v28 = vand.u32 4294901760, %v95_v62  ;;  %v270_v31 = vsub.f32 %v1355_v46, %v1391_v61  ;;  %s1188_s25 = scalar_lea.vmem %s845_s23, 128  ;;  %p1193_p1 = scmp.lt.s32.totalorder %s845_s23, %s845_s23 }
  0x11   :  { %987 = vmatpush3.msra.mxu0 %v1275_v16  ;;  %1014 = vmatpush3.msra.mxu1 %v229_v44  ;;  %v1415_v30 = vand.u32 4294901760, %v91_v2  ;;  %v1421_v32 = vand.u32 4294901760, %v1397_v63  ;;  %v1427_v36 = vsub.f32 %v96_v50, %v1388_v60  ;;  %v1432_v38 = vand.u32 4294901760, %v94_v8  ;;  %p1189_p0 = scmp.ne.s32.totalorder %s845_s23, %s1188_s25  ;;  %p1194_p2 = scmp.lt.s32.totalorder %s1188_s25, %s1188_s25 }
  0x12   :  { %988 = vmatprep.subr.mxu0 %v1300_v24  ;;  %1015 = vmatprep.subr.mxu1 %v236_v53  ;;  %v1429_v37 = vand.u32 4294901760, %v92_v13  ;;  %v264_v42 = vand.u32 4294901760, %v263_v6  ;;  %v277_v44 = vsub.f32 %v1382_v56, %v1404_v7  ;;  %v1441_v47 = vand.u32 4294901760, %v1410_v12 }
  0x13   :  { %989 = vmatpush3.msra.mxu0 %v1300_v24  ;;  %1016 = vmatpush3.msra.mxu1 %v236_v53  ;;  %v1435_v40 = vsub.f32 %v91_v2, %v1415_v30  ;;  %v1447_v49 = vand.u32 4294901760, %v93_v35  ;;  %v1450_v50 = vsub.f32 %v95_v62, %v1413_v28  ;;  %v271_v51 = vand.u32 4294901760, %v270_v31  ;;  %p1195_p3 = por %p1194_p2, %p1193_p1 }
  0x14   :  { %990 = vmatprep.subr.mxu0 %v1306_v26  ;;  %1017 = vmatprep.subr.mxu1 %v243_v57  ;;  %v1444_v48 = vsub.f32 %v92_v13, %v1429_v37  ;;  %v284_v52 = vsub.f32 %v1397_v63, %v1421_v32  ;;  %v1462_v59 = vsub.f32 %v94_v8, %v1432_v38  ;;  %v278_v62 = vand.u32 4294901760, %v277_v44 }
  0x15   :  { %991 = vmatpush3.msra.mxu0 %v1306_v26  ;;  %1018 = vmatpush3.msra.mxu1 %v243_v57  ;;  %v1655_v53 = vand.u32 4294901760, %v1435_v40  ;;  %v1457_v57 = vand.u32 4294901760, %v1427_v36  ;;  %v291_v0 = vsub.f32 %v1410_v12, %v1441_v47  ;;  %v1472_v2 = vsub.f32 %v93_v35, %v1447_v49  ;;  %p1196_p4 = pnand %p1195_p3, %p1189_p0 }
  0x16   :  { %992 = vmatprep.subr.mxu0 %v1337_v39  ;;  %1019 = vmatprep.subr.mxu1 %v250_v1  ;;  %v1654_v58 = vand.u32 4294901760, %v1444_v48  ;;  %v285_v6 = vand.u32 4294901760, %v284_v52  ;;  %v1485_v31 = vand.u32 4294901760, %v1462_v59  ;;  %vm83_vm0 = vcmask 31744  }
  0x17   :  { %993 = vmatpush3.msra.mxu0 %v1337_v39  ;;  %1020 = vmatpush3.msra.mxu1 %v250_v1  ;;  %v1469_v1 = vand.u32 4294901760, %v1450_v50  ;;  %v193_v8 = vsub.f32 %v1435_v40, %v1655_v53  ;;  %v298_v13 = vsub.f32 %v1427_v36, %v1457_v57  ;;  %v292_v35 = vand.u32 4294901760, %v291_v0 }
  0x18   :  { %994 = vmatprep.subr.mxu0 %v1352_v45  ;;  %1021 = vmatprep.subr.mxu1 %v257_v18  ;;  %v1492_v44 = vand.u32 4294901760, %v1472_v2  ;;  %v312_v0 = vsub.f32 %v1462_v59, %v1485_v31 }
  0x19   :  { %995 = vmatpush3.msra.mxu0 %v1352_v45  ;;  %1022 = vmatpush3.msra.mxu1 %v257_v18  ;;  %v203_v18 = vsub.f32 %v1444_v48, %v1654_v58  ;;  %v299_v52 = vand.u32 4294901760, %v298_v13 }
  0x1a   :  { %996 = vmatprep.subr.mxu0 %v1376_v54  ;;  %1023 = vmatprep.subr.mxu1 %v264_v42  ;;  %v319_v53 = vsub.f32 %v1472_v2, %v1492_v44 }
  0x1b   :  { %997 = vmatpush3.msra.mxu0 %v1376_v54  ;;  %1024 = vmatpush3.msra.mxu1 %v264_v42  ;;  %v305_v42 = vsub.f32 %v1450_v50, %v1469_v1  ;;  %v204_v58 = vand.u32 4294901760, %v203_v18 }
  0x1c   :  { %998 = vmatprep.subr.mxu0 %v1388_v60  ;;  %1025 = vmatprep.subr.mxu1 %v271_v51 }
  0x1d   :  { %999 = vmatpush3.msra.mxu0 %v1388_v60  ;;  %1026 = vmatpush3.msra.mxu1 %v271_v51  ;;  %v194_v51 = vand.u32 4294901760, %v193_v8  ;;  %v320_v8 = vand.u32 4294901760, %v319_v53 }
  0x1e   :  { %1000 = vmatprep.subr.mxu0 %v1413_v28  ;;  %1027 = vmatprep.subr.mxu1 %v278_v62 }
  0x1f   :  { %1001 = vmatpush3.msra.mxu0 %v1413_v28  ;;  %1028 = vmatpush3.msra.mxu1 %v278_v62  ;;  %v306_v62 = vand.u32 4294901760, %v305_v42 }
  0x20   :  { %1002 = vmatprep.subr.mxu0 %v1432_v38  ;;  %1029 = vmatprep.subr.mxu1 %v285_v6 }
  0x21   :  { %1003 = vmatpush3.msra.mxu0 %v1432_v38  ;;  %1030 = vmatpush3.msra.mxu1 %v285_v6  ;;  %v313_v6 = vand.u32 4294901760, %v312_v0 }
  0x22   :  { %1004 = vmatprep.subr.mxu0 %v1447_v49  ;;  %1031 = vmatprep.subr.mxu1 %v292_v35 }
  0x23   :  { %1005 = vmatpush3.msra.mxu0 %v1447_v49  ;;  %1032 = vmatpush3.msra.mxu1 %v292_v35 }
  0x24   :  { %1006 = vmatprep.mubr.f32.mxu0 %v194_v51  ;;  %1033 = vmatprep.subr.mxu1 %v299_v52 }
  0x25   :  { %1044 = vmatprep.subr.mxu0 %v1270_v14  ;;  %1007 = vmatmul.mubr.f32.vlgmr.msra.gmra.mxu0 %v204_v58 }
  0x26   :  { %1034 = vmatpush3.msra.mxu1 %v299_v52  ;;  %1045 = vmatpush3.msra.mxu0 %v1270_v14  ;;  %v1656_v14 = vand.u32 4294901760, %v1435_v40 }
  0x27   :  { %1035 = vmatprep.subr.mxu1 %v306_v62  ;;  %1046 = vmatprep.subr.mxu0 %v1273_v15 }
  0x28   :  { %1036 = vmatpush3.msra.mxu1 %v306_v62  ;;  %1047 = vmatpush3.msra.mxu0 %v1273_v15  ;;  %v1657_v15 = vand.u32 4294901760, %v1444_v48 }
  0x29   :  { %1037 = vmatprep.subr.mxu1 %v313_v6  ;;  %1048 = vmatprep.subr.mxu0 %v1278_v17 }
  0x2a   :  { %1038 = vmatpush3.msra.mxu1 %v313_v6  ;;  %1049 = vmatpush3.msra.mxu0 %v1278_v17 }
  0x2b   :  { %1039 = vmatprep.subr.mxu1 %v320_v8  ;;  %1050 = vmatprep.subr.mxu0 %v1285_v19 }
  0x2c   :  { %1040 = vmatpush3.msra.mxu1 %v320_v8  ;;  %1041 = vmatprep.mubr.f32.mxu1 %v1415_v30 }
  0x2d   :  { %1051 = vmatpush3.msra.mxu0 %v1285_v19  ;;  %1042 = vmatmul.mubr.f32.vlgmr.msra.gmra.mxu1 %v1429_v37 }
  0x2e   :  { %1052 = vmatprep.subr.mxu0 %v1288_v20  ;;  %1079 = vmatprep.subr.mxu1 %v1241_v3 }
  0x2f   :  { %1053 = vmatpush3.msra.mxu0 %v1288_v20  ;;  %1080 = vmatpush3.msra.mxu1 %v1241_v3 }
  0x30   :  { %1054 = vmatprep.subr.mxu0 %v1315_v29  ;;  %1081 = vmatprep.subr.mxu1 %v1243_v4 }
  0x31   :  { %1055 = vmatpush3.msra.mxu0 %v1315_v29  ;;  %1082 = vmatpush3.msra.mxu1 %v1243_v4 }
  0x32   :  { %1056 = vmatprep.subr.mxu0 %v1325_v33  ;;  %1083 = vmatprep.subr.mxu1 %v1245_v5 }
  0x33   :  { %1057 = vmatpush3.msra.mxu0 %v1325_v33  ;;  %1084 = vmatpush3.msra.mxu1 %v1245_v5 }
  0x34   :  { %1058 = vmatprep.subr.mxu0 %v1349_v43  ;;  %1085 = vmatprep.subr.mxu1 %v1256_v9 }
  0x35   :  { %1059 = vmatpush3.msra.mxu0 %v1349_v43  ;;  %1086 = vmatpush3.msra.mxu1 %v1256_v9 }
  0x36   :  { %1060 = vmatprep.subr.mxu0 %v1355_v46  ;;  %1087 = vmatprep.subr.mxu1 %v1258_v10 }
  0x37   :  { %1061 = vmatpush3.msra.mxu0 %v1355_v46  ;;  %1088 = vmatpush3.msra.mxu1 %v1258_v10 }
  0x38   :  { %1062 = vmatprep.subr.mxu0 %v1382_v56  ;;  %1089 = vmatprep.subr.mxu1 %v1260_v11 }
  0x39   :  { %1063 = vmatpush3.msra.mxu0 %v1382_v56  ;;  %1090 = vmatpush3.msra.mxu1 %v1260_v11 }
  0x3a   :  { %1064 = vmatprep.subr.mxu0 %v1397_v63  ;;  %1091 = vmatprep.subr.mxu1 %v1275_v16 }
  0x3b   :  { %1065 = vmatpush3.msra.mxu0 %v1397_v63  ;;  %1092 = vmatpush3.msra.mxu1 %v1275_v16 }
  0x3c   :  { %1066 = vmatprep.subr.mxu0 %v1410_v12  ;;  %1093 = vmatprep.subr.mxu1 %v1300_v24 }
  0x3d   :  { %1067 = vmatpush3.msra.mxu0 %v1410_v12  ;;  %1094 = vmatpush3.msra.mxu1 %v1300_v24 }
  0x3e   :  { %1068 = vmatprep.subr.mxu0 %v1427_v36  ;;  %1095 = vmatprep.subr.mxu1 %v1306_v26 }
  0x3f   :  { %1069 = vmatpush3.msra.mxu0 %v1427_v36  ;;  %1096 = vmatpush3.msra.mxu1 %v1306_v26 }
  0x40   :  { %1070 = vmatprep.subr.mxu0 %v1450_v50  ;;  %1097 = vmatprep.subr.mxu1 %v1337_v39 }
  0x41   :  { %1071 = vmatpush3.msra.mxu0 %v1450_v50  ;;  %1098 = vmatpush3.msra.mxu1 %v1337_v39 }
  0x42   :  { %1072 = vmatprep.subr.mxu0 %v1462_v59  ;;  %1099 = vmatprep.subr.mxu1 %v1352_v45 }
  0x43   :  { %1073 = vmatpush3.msra.mxu0 %v1462_v59  ;;  %1100 = vmatpush3.msra.mxu1 %v1352_v45 }
  0x44   :  { %1074 = vmatprep.subr.mxu0 %v1472_v2  ;;  %1101 = vmatprep.subr.mxu1 %v1376_v54 }
  0x45   :  { %1075 = vmatpush3.msra.mxu0 %v1472_v2  ;;  %1076 = vmatprep.mubr.f32.mxu0 %v1435_v40 }
  0x46   :  { %1102 = vmatpush3.msra.mxu1 %v1376_v54  ;;  %1077 = vmatmul.mubr.f32.vlgmr.msra.gmra.mxu0 %v1444_v48 }
  0x47   :  { %1103 = vmatprep.subr.mxu1 %v1388_v60  ;;  %1114 = vmatprep.subr.mxu0 %v1292_v21 }
  0x48   :  { %1104 = vmatpush3.msra.mxu1 %v1388_v60  ;;  %1115 = vmatpush3.msra.mxu0 %v1292_v21 }
  0x49   :  { %1105 = vmatprep.subr.mxu1 %v1413_v28  ;;  %1116 = vmatprep.subr.mxu0 %v1295_v22 }
  0x4a   :  { %1106 = vmatpush3.msra.mxu1 %v1413_v28  ;;  %1117 = vmatpush3.msra.mxu0 %v1295_v22 }
  0x4b   :  { %1107 = vmatprep.subr.mxu1 %v1432_v38  ;;  %1118 = vmatprep.subr.mxu0 %v1298_v23 }
  0x4c   :  { %1108 = vmatpush3.msra.mxu1 %v1432_v38  ;;  %1119 = vmatpush3.msra.mxu0 %v1298_v23 }
  0x4d   :  { %1109 = vmatprep.subr.mxu1 %v1447_v49  ;;  %1120 = vmatprep.subr.mxu0 %v1304_v25 }
  0x4e   :  { %1110 = vmatpush3.msra.mxu1 %v1447_v49  ;;  %1111 = vmatprep.mubr.f32.mxu1 %v1656_v14 }
  0x4f   :  { %1121 = vmatpush3.msra.mxu0 %v1304_v25  ;;  %1112 = vmatmul.mubr.f32.vlgmr.msra.gmra.mxu1 %v1657_v15 }
  0x50   :  { %1122 = vmatprep.subr.mxu0 %v1309_v27  ;;  %1149 = vmatprep.subr.mxu1 %v1241_v3 }
  0x51   :  { %1123 = vmatpush3.msra.mxu0 %v1309_v27  ;;  %1150 = vmatpush3.msra.mxu1 %v1241_v3  ;;  %v1210_v3 = vmov 0.0  }
  0x52   :  { %1124 = vmatprep.subr.mxu0 %v1329_v34  ;;  %1151 = vmatprep.subr.mxu1 %v1243_v4  ;;  %84 = vst.msk [vmem:[#allocation2] sm:$0xff] %vm83_vm0, %v1210_v3 }
  0x53   :  { %1125 = vmatpush3.msra.mxu0 %v1329_v34  ;;  %1152 = vmatpush3.msra.mxu1 %v1243_v4 }
  0x54   :  { %1126 = vmatprep.subr.mxu0 %v1343_v41  ;;  %1153 = vmatprep.subr.mxu1 %v1245_v5 }
  0x55   :  { %1127 = vmatpush3.msra.mxu0 %v1343_v41  ;;  %1154 = vmatpush3.msra.mxu1 %v1245_v5  ;;  %v795_v5 = vlaneseq }
  0x56   :  { %1128 = vmatprep.subr.mxu0 %v1379_v55  ;;  %1155 = vmatprep.subr.mxu1 %v1256_v9 }
  0x57   :  { %1129 = vmatpush3.msra.mxu0 %v1379_v55  ;;  %1156 = vmatpush3.msra.mxu1 %v1256_v9  ;;  %v799_v27 = vand.u32 127, %v795_v5 }
  0x58   :  { %1130 = vmatprep.subr.mxu0 %v1391_v61  ;;  %1157 = vmatprep.subr.mxu1 %v1258_v10 }
  0x59   :  { %1131 = vmatpush3.msra.mxu0 %v1391_v61  ;;  %1158 = vmatpush3.msra.mxu1 %v1258_v10 }
  0x5a   :  { %1132 = vmatprep.subr.mxu0 %v1404_v7  ;;  %1159 = vmatprep.subr.mxu1 %v1260_v11 }
  0x5b   :  { %1133 = vmatpush3.msra.mxu0 %v1404_v7  ;;  %1160 = vmatpush3.msra.mxu1 %v1260_v11 }
  0x5c   :  { %1134 = vmatprep.subr.mxu0 %v1421_v32  ;;  %1161 = vmatprep.subr.mxu1 %v1275_v16 }
  0x5d   :  { %1135 = vmatpush3.msra.mxu0 %v1421_v32  ;;  %1162 = vmatpush3.msra.mxu1 %v1275_v16  ;;  %v796_v16 = vshrl.u32 %v795_v5, 7 }
  0x5e   :  { %1136 = vmatprep.subr.mxu0 %v1441_v47  ;;  %1163 = vmatprep.subr.mxu1 %v1300_v24 }
  0x5f   :  { %1137 = vmatpush3.msra.mxu0 %v1441_v47  ;;  %1164 = vmatpush3.msra.mxu1 %v1300_v24  ;;  %v797_v21 = vadd.s32 8, %v796_v16  ;;  %v803_v41 = vmul.u32 4, %v796_v16 }
  0x60   :  { %1138 = vmatprep.subr.mxu0 %v1457_v57  ;;  %1165 = vmatprep.subr.mxu1 %v1306_v26 }
  0x61   :  { %1139 = vmatpush3.msra.mxu0 %v1457_v57  ;;  %1166 = vmatpush3.msra.mxu1 %v1306_v26  ;;  %v804_v29 = vmul.u32 4, %v797_v21  ;;  %v805_v61 = vadd.s32 %v803_v41, %v799_v27 }
  0x62   :  { %1140 = vmatprep.subr.mxu0 %v1469_v1  ;;  %1167 = vmatprep.subr.mxu1 %v1337_v39 }
  0x63   :  { %1141 = vmatpush3.msra.mxu0 %v1469_v1  ;;  %1168 = vmatpush3.msra.mxu1 %v1337_v39  ;;  %vm807_vm2 = vcmp.lt.s32.totalorder %v805_v61, 64 }
  0x64   :  { %1142 = vmatprep.subr.mxu0 %v1485_v31  ;;  %1169 = vmatprep.subr.mxu1 %v1352_v45 }
  0x65   :  { %1143 = vmatpush3.msra.mxu0 %v1485_v31  ;;  %1170 = vmatpush3.msra.mxu1 %v1352_v45 }
  0x66   :  { %1144 = vmatprep.subr.mxu0 %v1492_v44  ;;  %1171 = vmatprep.subr.mxu1 %v1376_v54 }
  0x67   :  { %1145 = vmatpush3.msra.mxu0 %v1492_v44  ;;  %1146 = vmatprep.mubr.f32.mxu0 %v1415_v30 }
  0x68   :  { %1172 = vmatpush3.msra.mxu1 %v1376_v54  ;;  %1147 = vmatmul.mubr.f32.vlgmr.msra.gmra.mxu0 %v1429_v37  ;;  %v806_v54 = vadd.s32 %v804_v29, %v799_v27 }
  0x69   :  { %1173 = vmatprep.subr.mxu1 %v1388_v60  ;;  %1181 = vmatprep.mubr.f32.mxu1 %v1415_v30 }
  0x6a   :  { %1174 = vmatpush3.msra.mxu1 %v1388_v60  ;;  %vm808_vm1 = vcmp.lt.s32.totalorder %v806_v54, 64 }
  0x6b   :  { %1175 = vmatprep.subr.mxu1 %v1413_v28 }
  0x6c   :  { %1176 = vmatpush3.msra.mxu1 %v1413_v28 }
  0x6d   :  { %1177 = vmatprep.subr.mxu1 %v1432_v38 }
  0x6e   :  { %1178 = vmatpush3.msra.mxu1 %v1432_v38  ;;  %v815_v38 = vld [vmem:[#allocation2] sm:$0xff] }
  0x6f   :  { %1179 = vmatprep.subr.mxu1 %v1447_v49 }
  0x70   :  { %1180 = vmatpush3.msra.mxu1 %v1447_v49 }
  0x71   :  { %1182 = vmatmul.mubr.f32.vlgmr.msra.gmra.mxu1 %v1429_v37 }
  0xe5   :  { %v1008_v4 = vpop.f32.mrf.mxu0 }
  0xe7   :  { %v196_v9 = vpop.f32.mrf.mxu0 }
  0xed   :  { %v1043_v10 = vpop.f32.mrf.mxu1 }
  0xee   :  { %v364_v22 = vadd.f32 %v1043_v10, %v1008_v4 }
  0xef   :  { %v357_v17 = vpop.f32.mrf.mxu1 }
  0xf0   :  { %v358_v24 = vadd.f32 %v357_v17, %v196_v9 }
 0x106   :  { %v1078_v11 = vpop.f32.mrf.mxu0 }
 0x107   :  { %v475_v25 = vadd.f32 %v1078_v11, %v364_v22 }
 0x108   :  { %v467_v19 = vpop.f32.mrf.mxu0 }
 0x109   :  { %v468_v33 = vadd.f32 %v467_v19, %v358_v24 }
 0x10f   :  { %v1113_v20 = vpop.f32.mrf.mxu1 }
 0x110   :  { %v572_v34 = vadd.f32 %v1113_v20, %v475_v25 }
 0x111   :  { %v563_v26 = vpop.f32.mrf.mxu1 }
 0x112   :  { %v564_v43 = vadd.f32 %v563_v26, %v468_v33 }
 0x128   :  { %v1148_v23 = vpop.f32.mrf.mxu0 }
 0x129   :  { %v697_v45 = vadd.f32 %v1148_v23, %v572_v34 }
 0x12a   :  { %v690_v39 = vpop.f32.mrf.mxu0 }
 0x12b   :  { %v691_v55 = vadd.f32 %v690_v39, %v564_v43 }
 0x131   :  { %v1183_v46 = vpop.f32.mrf.mxu1 }
 0x132   :  { %v790_v56 = vadd.f32 %v1183_v46, %v697_v45 }
 0x133   :  { %v783_v60 = vpop.f32.mrf.mxu1 }
 0x134   :  { %v865_v63 = vadd.f32 -1.0, %v790_v56  ;;  %v784_v7 = vadd.f32 %v783_v60, %v691_v55 }
 0x136   :  { %v812_v12 = vmax.f32 %v865_v63, 0.0  ;;  %v864_v28 = vadd.f32 -1.0, %v784_v7 }
 0x138   :  { %v814_v30 = vsel %vm808_vm1, %v812_v12, 0.0  ;;  %v811_v32 = vmax.f32 %v864_v28, 0.0 }
 0x139   :  { %v818_v37 = vsel %vm83_vm0, %v814_v30, 0.0 }
 0x13a   :  { %v813_v36 = vsel %vm807_vm2, %v811_v32, 0.0 }
 0x13b   :  { %v817_v40 = vsel %vm83_vm0, %v813_v36, 0.0 }
 0x13c   :  { %v819_v47 = vadd.f32 %v818_v37, %v817_v40 }
 0x13e   :  { %v820_v48 = vadd.f32 %v819_v47, %v815_v38 }
 0x140   :  { %821 = vst.msk [vmem:[#allocation2] sm:$0xff] %vm83_vm0, %v820_v48 }
 0x147   :  { %v825_v49 = vld [vmem:[#allocation2] sm:$0xff] }
 0x148   :  { %v826_v50 = vsel %vm83_vm0, %v825_v49, 0.0 }
 0x149   :  { %827 = vadd.xlane.f32.xlu0 %v826_v50 }
 0x1d2   :  { %v828_v53 = vpop.xlane.xlu0 %827 }
 0x1d3   :  { %v829_v57 = vrot.slane %v828_v53, 4 }
 0x1d5   :  { %v830_v58 = vadd.f32 %v829_v57, %v828_v53 }
 0x1d7   :  { %v831_v59 = vrot.slane %v830_v58, 2 }
 0x1d9   :  { %v832_v1 = vadd.f32 %v831_v59, %v830_v58 }
 0x1db   :  { %v833_v2 = vrot.slane %v832_v1, 1 }
 0x1dd   :  { %v834_v13 = vadd.f32 %v833_v2, %v832_v1 }
 0x1df   :  { %1184 = vpush %v834_v13 }
 0x210   :  { %s1185_s24 = spop %1184 }
 0x211   :  { %v836_v18 = vstv %s1185_s24 }
 0x212   :  { %837 = vst [vmem:[#allocation3] sm:$0xff] %v836_v18 }
 0x213   :  { %1199 = shalt.err (!%p1196_p4)
}
 0x214   :  { %847 = dma.vmem_to_hbm [thread:$0]  %s845_s23, 128, %s1653_s3, [#allocation4]  }
 0x215   :  { %1208 = dma.done.wait [#allocation4], 128  }
 0x216   :  { %1209 = vsyncadd [#allocation4], 4294967168 }
 0x217   :  { %851 = vsyncpa [#allocation4], 1 }

</bundles_post_ra>
